<compile_context>
chip_gen: v7x
topology: tpu7x:2x2x1
jax: 0.10.0
libtpu: 0.0.40
codegen_flags: <defaults>
</compile_context>

<pallas_src>
import functools

import jax
import jax.numpy as jnp
from jax.experimental import pallas as pl
from jax.experimental.pallas import tpu as pltpu


# ----------------------------------------------------------------------------
# Small helpers
# ----------------------------------------------------------------------------
def _cdiv(a, b):
    return -(-a // b)


def _round_up(x, m):
    return _cdiv(x, m) * m


def _round_down(x, m):
    return (x // m) * m


def _vmem_budget_bytes():
    """~70% of physical VMEM, generation-aware (v7x: 64 MiB, v5e/v6e: 128 MiB)."""
    try:
        cap = int(pltpu.get_tpu_info().vmem_capacity_bytes)
    except Exception:
        cap = 64 * 1024 * 1024
    return max(int(cap * 0.7), 32 * 1024 * 1024)


def _choose_tiles(hw, bc, itemsize, n_streams, budget, block_bytes):
    """Pick (hw_padded, lane_tile, n_tiles).

    Lane tile is ~block_bytes big, a multiple of 128, and sized so the pipelined
    working set (2 buffers x n_streams x bc x thw x itemsize) fits the VMEM budget.
    hw is padded up so that every tile is fully in-bounds (no masked partial tiles).
    """
    hw128 = _round_up(hw, 128)
    thw = max(_round_down(block_bytes // max(bc * itemsize, 1), 128), 128)
    cap = _round_down(budget // (2 * n_streams * bc * itemsize), 128)
    if cap >= 128:
        thw = min(thw, cap)
    if thw >= hw128:
        return hw128, hw128, 1
    n_tiles = _cdiv(hw128, thw)
    thw = _round_up(_cdiv(hw128, n_tiles), 128)
    return thw * n_tiles, thw, n_tiles


# ----------------------------------------------------------------------------
# Fast path: everything resident in VMEM, single kernel
# ----------------------------------------------------------------------------
def _fused_kernel(e1t_ref, e2t_ref, *refs, height, inv_hw):
    """pool -> MLP -> softmax(height) -> weighted sum, one HBM read of the branches."""
    x_refs = refs[:height]
    o_ref = refs[height]

    # Global average pool over branches & spatial, accumulating in f32.
    pooled = jnp.sum(x_refs[0][...].astype(jnp.float32), axis=-1, keepdims=True)
    for k in range(1, height):
        pooled = pooled + jnp.sum(x_refs[k][...].astype(jnp.float32),
                                  axis=-1, keepdims=True)
    pooled = pooled * inv_hw                                     # (B*C, 1)

    # 1x1-conv MLP as column matmuls against block-diagonal expanded weights.
    # Keeps the (B*C, 1) sublane layout end-to-end: no reshape/transpose in-kernel.
    hid = jnp.dot(e1t_ref[...], pooled, preferred_element_type=jnp.float32)  # (B*d, 1)
    hid = jnp.maximum(hid, 0.0)
    logits = [jnp.dot(e2t_ref[k], hid, preferred_element_type=jnp.float32)
              for k in range(height)]                            # height x (B*C, 1)

    # Numerically stable softmax over the `height` branches (pure elementwise).
    m = logits[0]
    for k in range(1, height):
        m = jnp.maximum(m, logits[k])
    exps = [jnp.exp(l - m) for l in logits]
    denom = exps[0]
    for k in range(1, height):
        denom = denom + exps[k]
    inv_denom = 1.0 / denom

    # Attention-weighted sum of the branches.
    acc = x_refs[0][...].astype(jnp.float32) * (exps[0] * inv_denom)
    for k in range(1, height):
        acc = acc + x_refs[k][...].astype(jnp.float32) * (exps[k] * inv_denom)
    o_ref[...] = acc.astype(o_ref.dtype)


def _skfusion_resident(xs, w1, w2, B, C, HW, dtype, itemsize, budget):
    height = len(xs)
    BC = B * C
    d = w1.shape[1]

    # Block-diagonal expanded 1x1-conv weights (tiny; built once in JAX).
    eye = jnp.eye(B, dtype=jnp.float32)
    e1t = jnp.kron(eye, w1.T.astype(jnp.float32))                        # (B*d, B*C)
    e2t = jnp.stack(
        [jnp.kron(eye, w2[:, k * C:(k + 1) * C].T.astype(jnp.float32))
         for k in range(height)], axis=0)                                # (height, B*C, B*d)
    e_bytes = int(e1t.size + e2t.size) * 4

    cost = pl.CostEstimate(
        flops=int(3 * height * BC * HW + 2 * B * d * BC * (1 + height)),
        transcendentals=int(height * BC),
        bytes_accessed=int((height + 1) * BC * HW * itemsize + e_bytes))

    out = pl.pallas_call(
        functools.partial(_fused_kernel, height=height, inv_hw=1.0 / HW),
        out_shape=jax.ShapeDtypeStruct((BC, HW), dtype),
        grid=(1,),
        in_specs=(
            [pl.BlockSpec((B * d, BC), lambda i: (0, 0)),
             pl.BlockSpec((height, BC, B * d), lambda i: (0, 0, 0))]
            + [pl.BlockSpec((BC, HW), lambda i: (0, 0)) for _ in range(height)]),
        out_specs=pl.BlockSpec((BC, HW), lambda i: (0, 0)),
        compiler_params=pltpu.CompilerParams(
            dimension_semantics=("arbitrary",),
            vmem_limit_bytes=budget),
        cost_estimate=cost,
    )(e1t, e2t, *xs)
    return out


# ----------------------------------------------------------------------------
# General path, pass 1: streaming global-sum pool (f32 accumulation)
# ----------------------------------------------------------------------------
def _pool_kernel(*refs, height):
    x_refs = refs[:height]          # each (BC, THW) tile
    o_ref = refs[height]            # (BC, 1) f32 partial accumulator (resident per split)

    @pl.when(pl.program_id(1) == 0)
    def _init():
        o_ref[...] = jnp.zeros_like(o_ref)

    # Add the branches elementwise (VPU) first, then a single cross-lane reduce (XLU).
    xsum = x_refs[0][...].astype(jnp.float32)
    for k in range(1, height):
        xsum = xsum + x_refs[k][...].astype(jnp.float32)
    o_ref[...] += jnp.sum(xsum, axis=-1, keepdims=True)


# ----------------------------------------------------------------------------
# General path, pass 2: streaming attention-weighted sum of the branches
# ----------------------------------------------------------------------------
def _wsum_kernel(attn_ref, *refs, height):
    x_refs = refs[:height]          # each (BC, THW) tile
    o_ref = refs[height]            # (BC, THW) output tile

    acc = x_refs[0][...].astype(jnp.float32) * attn_ref[0]   # attn_ref[k]: (BC, 1) column
    for k in range(1, height):
        acc = acc + x_refs[k][...].astype(jnp.float32) * attn_ref[k]
    o_ref[...] = acc.astype(o_ref.dtype)


def _skfusion_two_pass(xs, w1, w2, B, C, HW, dtype, itemsize, budget, block_bytes):
    height = len(xs)
    BC = B * C

    HWP, thw, n_tiles = _choose_tiles(HW, BC, itemsize, height + 1, budget, block_bytes)
    if HWP != HW:
        # Zero padding is safe: zeros don't perturb pass-1 sums, pass-2 padding is sliced off.
        xs = [jnp.pad(x, ((0, 0), (0, HWP - HW))) for x in xs]

    # Split pass-1 HW tiles across a leading 'parallel' axis (2 TensorCores on v7x).
    n_split = 2 if (n_tiles >= 2 and n_tiles % 2 == 0) else 1
    tiles_per_split = n_tiles // n_split

    def in_map1(c, i):
        return (0, c * tiles_per_split + i)

    cost1 = pl.CostEstimate(
        flops=int(height * BC * HWP),
        transcendentals=0,
        bytes_accessed=int(height * BC * HWP * itemsize + n_split * BC * 4))

    partials = pl.pallas_call(
        functools.partial(_pool_kernel, height=height),
        out_shape=jax.ShapeDtypeStruct((n_split, BC, 1), jnp.float32),
        grid=(n_split, tiles_per_split),
        in_specs=[pl.BlockSpec((BC, thw), in_map1) for _ in range(height)],
        out_specs=pl.BlockSpec((None, BC, 1), lambda c, i: (c, 0, 0)),
        compiler_params=pltpu.CompilerParams(
            dimension_semantics=("parallel", "arbitrary"),
            vmem_limit_bytes=budget),
        cost_estimate=cost1,
    )(*xs)

    # Tiny MLP + softmax over `height` in plain JAX (few hundred FLOPs).  The general
    # path only runs for large HW where these extra launches are noise.
    # TODO(synk): optionally fold this into pass 1's last grid step when n_split == 1.
    pooled = partials.sum(axis=0).reshape(B, C) * (1.0 / HW)       # AdaptiveAvgPool2d(1)
    hid = jnp.maximum(pooled.astype(jnp.float32) @ w1.astype(jnp.float32), 0.0)
    logits = hid @ w2.astype(jnp.float32)
    attn = jax.nn.softmax(logits.reshape(B, height, C), axis=1)    # softmax over height
    attn_k = jnp.transpose(attn, (1, 0, 2)).reshape(height, BC, 1).astype(jnp.float32)

    cost2 = pl.CostEstimate(
        flops=int(2 * height * BC * HWP),
        transcendentals=0,
        bytes_accessed=int((height + 1) * BC * HWP * itemsize + height * BC * 4))

    out = pl.pallas_call(
        functools.partial(_wsum_kernel, height=height),
        out_shape=jax.ShapeDtypeStruct((BC, HWP), dtype),
        grid=(n_tiles,),
        in_specs=(
            [pl.BlockSpec((height, BC, 1), lambda i: (0, 0, 0))]          # attn (resident)
            + [pl.BlockSpec((BC, thw), lambda i: (0, i)) for _ in range(height)]),
        out_specs=pl.BlockSpec((BC, thw), lambda i: (0, i)),
        compiler_params=pltpu.CompilerParams(
            dimension_semantics=("parallel",),
            vmem_limit_bytes=budget),
        cost_estimate=cost2,
    )(attn_k, *xs)

    if HWP != HW:
        out = out[:, :HW]
    return out


# ----------------------------------------------------------------------------
# Wrapper / dispatcher
# ----------------------------------------------------------------------------
def skfusion(in_feats, w1, w2, *, block_bytes=2 * 1024 * 1024, force_two_pass=False):
    """in_feats: list of `height` arrays (B, C, H, W); w1: (C, d); w2: (d, height*C)."""
    height = len(in_feats)
    B, C, H, W = in_feats[0].shape
    HW = H * W
    BC = B * C
    d = w1.shape[1]
    dtype = in_feats[0].dtype
    itemsize = jnp.dtype(dtype).itemsize

    # Contiguous reshapes: pack (B, C) onto sublanes, H*W onto lanes.
    xs = [f.reshape(BC, HW) for f in in_feats]

    budget = _vmem_budget_bytes()

    # Resident single-pass fast path when the working set fits VMEM
    # (2x for pipelining buffers + headroom for f32 temporaries).
    e_bytes = (B * d * BC + height * BC * B * d) * 4
    resident_bytes = 2 * ((height + 1) * BC * HW * itemsize + e_bytes) + 4 * BC * HW * 4
    if (not force_two_pass) and resident_bytes <= budget:
        try:
            out = _skfusion_resident(xs, w1, w2, B, C, HW, dtype, itemsize, budget)
            return out.reshape(B, C, H, W)
        except Exception:
            pass  # graceful fallback to the streaming two-pass path

    out = _skfusion_two_pass(xs, w1, w2, B, C, HW, dtype, itemsize, budget, block_bytes)
    return out.reshape(B, C, H, W)


# ----------------------------------------------------------------------------
# Pure-JAX reference (mirrors the PyTorch forward exactly)
# ----------------------------------------------------------------------------
def skfusion_ref(in_feats, w1, w2):
    height = len(in_feats)
    B, C, H, W = in_feats[0].shape
    x = jnp.stack(in_feats, axis=1)                 # (B, height, C, H, W)
    feats_sum = x.sum(axis=1)                       # (B, C, H, W)
    pooled = feats_sum.mean(axis=(2, 3))            # (B, C)
    hid = jax.nn.relu(pooled @ w1)                  # (B, d)
    logits = hid @ w2                               # (B, height*C)
    attn = jax.nn.softmax(logits.reshape(B, height, C), axis=1)
    return (x * attn[:, :, :, None, None]).sum(axis=1)


if __name__ == "__main__":
    # module config: dim=4 channels, height=2, reduction=8 -> d = max(int(4/8), 4) = 4
    B, dim, H, W = 2, 4, 16, 16
    height, reduction = 2, 8
    d = max(int(dim / reduction), 4)

    key = jax.random.PRNGKey(0)
    k_x0, k_x1, k_w1, k_w2 = jax.random.split(key, 4)
    feat0 = jax.random.normal(k_x0, (B, dim, H, W), dtype=jnp.float32)
    feat1 = jax.random.normal(k_x1, (B, dim, H, W), dtype=jnp.float32)

    # Synthetic 1x1-conv weights (bias=False), stored pre-transposed for matmul.
    w1_conv = jax.random.normal(k_w1, (d, dim), dtype=jnp.float32) * 0.2       # conv1.weight
    w2_conv = jax.random.normal(k_w2, (dim * height, d), dtype=jnp.float32) * 0.2
    w1 = w1_conv.T                      # (dim, d)
    w2 = w2_conv.T                      # (d, dim*height)

    feats = [feat0, feat1]
    ref = skfusion_ref(feats, w1, w2)

    # 1) resident single-pass fast path (default at this size).
    out_fast = jax.block_until_ready(skfusion(feats, w1, w2))
    # 2) streaming two-pass path, single full-width lane tile.
    out_two = jax.block_until_ready(skfusion(feats, w1, w2, force_two_pass=True))
    # 3) streaming two-pass path, multi-tile grid + split pass-1 accumulators.
    out_tiled = jax.block_until_ready(
        skfusion(feats, w1, w2, force_two_pass=True, block_bytes=4096))

    for out in (out_fast, out_two, out_tiled):
        assert out.shape == (B, dim, H, W)
        assert jnp.allclose(out, ref, atol=1e-5, rtol=1e-5), "mismatch vs reference"

    # 4) non-128-divisible spatial size exercises the pad + slice path.
    k_y0, k_y1 = jax.random.split(jax.random.PRNGKey(1), 2)
    featо0 = jax.random.normal(k_y0, (B, dim, 15, 15), dtype=jnp.float32)
    featо1 = jax.random.normal(k_y1, (B, dim, 15, 15), dtype=jnp.float32)
    odd = [featо0, featо1]
    out_odd = jax.block_until_ready(
        skfusion(odd, w1, w2, force_two_pass=True, block_bytes=4096))
    assert jnp.allclose(out_odd, skfusion_ref(odd, w1, w2), atol=1e-5, rtol=1e-5), \
        "mismatch vs reference (padded path)"

    print("KERNEL_OK")
</pallas_src>

<mosaic_0001>
module attributes {stable_mosaic.version = 11 : i64} {
  func.func @_fused_kernel(%arg0: i32, %arg1: memref<8x8xf32, #tpu.memory_space<vmem>>, %arg2: memref<2x8x8xf32, #tpu.memory_space<vmem>>, %arg3: memref<8x256xf32, #tpu.memory_space<vmem>>, %arg4: memref<8x256xf32, #tpu.memory_space<vmem>>, %arg5: memref<8x256xf32, #tpu.memory_space<vmem>>) attributes {dimension_semantics = [#tpu.dimension_semantics<arbitrary>], iteration_bounds = array<i64: 1>, scalar_prefetch = 0 : i64, scratch_operands = 0 : i64, tpu.core_type = #tpu.core_type<tc>, window_params = [{pipeline_mode = #tpu.pipeline_mode<synchronous>, transform_indices = @transform_0, window_bounds = array<i64: 8, 8>}, {pipeline_mode = #tpu.pipeline_mode<synchronous>, transform_indices = @transform_1, window_bounds = array<i64: 2, 8, 8>}, {pipeline_mode = #tpu.pipeline_mode<synchronous>, transform_indices = @transform_2, window_bounds = array<i64: 8, 256>}, {pipeline_mode = #tpu.pipeline_mode<synchronous>, transform_indices = @transform_3, window_bounds = array<i64: 8, 256>}, {pipeline_mode = #tpu.pipeline_mode<synchronous>, transform_indices = @transform_4, window_bounds = array<i64: 8, 256>}]} {
    %c0 = arith.constant 0 : index
    %c0_0 = arith.constant 0 : index
    %0 = vector.load %arg3[%c0, %c0_0] : memref<8x256xf32, #tpu.memory_space<vmem>>, vector<8x256xf32>
    %cst = arith.constant dense<0.000000e+00> : vector<8xf32>
    %1 = vector.multi_reduction <add>, %0, %cst [1] : vector<8x256xf32> to vector<8xf32>
    %2 = vector.shape_cast %1 : vector<8xf32> to vector<8x1xf32>
    %c0_1 = arith.constant 0 : index
    %c0_2 = arith.constant 0 : index
    %3 = vector.load %arg4[%c0_1, %c0_2] : memref<8x256xf32, #tpu.memory_space<vmem>>, vector<8x256xf32>
    %cst_3 = arith.constant dense<0.000000e+00> : vector<8xf32>
    %4 = vector.multi_reduction <add>, %3, %cst_3 [1] : vector<8x256xf32> to vector<8xf32>
    %5 = vector.shape_cast %4 : vector<8xf32> to vector<8x1xf32>
    %6 = arith.addf %2, %5 : vector<8x1xf32>
    %cst_4 = arith.constant 3.906250e-03 : f32
    %7 = vector.broadcast %cst_4 : f32 to vector<8x1xf32>
    %8 = arith.mulf %6, %7 : vector<8x1xf32>
    %c0_5 = arith.constant 0 : index
    %c0_6 = arith.constant 0 : index
    %9 = vector.load %arg1[%c0_5, %c0_6] : memref<8x8xf32, #tpu.memory_space<vmem>>, vector<8x8xf32>
    %cst_7 = arith.constant dense<0.000000e+00> : vector<8x1xf32>
    %10 = tpu.matmul %9, %8, %cst_7 {dimension_numbers = #tpu.dot_dimension_numbers<[1], [0], [0], [1], [0, 0, 1, 1], [], []>} : vector<8x8xf32>, vector<8x1xf32>, vector<8x1xf32> -> vector<8x1xf32>
    %cst_8 = arith.constant 0.000000e+00 : f32
    %11 = vector.broadcast %cst_8 : f32 to vector<8x1xf32>
    %12 = arith.maximumf %10, %11 : vector<8x1xf32>
    %c0_9 = arith.constant 0 : index
    %c0_10 = arith.constant 0 : index
    %c0_11 = arith.constant 0 : index
    %13 = vector.load %arg2[%c0_9, %c0_10, %c0_11] : memref<2x8x8xf32, #tpu.memory_space<vmem>>, vector<1x8x8xf32>
    %14 = vector.shape_cast %13 : vector<1x8x8xf32> to vector<8x8xf32>
    %cst_12 = arith.constant dense<0.000000e+00> : vector<8x1xf32>
    %15 = tpu.matmul %14, %12, %cst_12 {dimension_numbers = #tpu.dot_dimension_numbers<[1], [0], [0], [1], [0, 0, 1, 1], [], []>} : vector<8x8xf32>, vector<8x1xf32>, vector<8x1xf32> -> vector<8x1xf32>
    %c1 = arith.constant 1 : index
    %c0_13 = arith.constant 0 : index
    %c0_14 = arith.constant 0 : index
    %16 = vector.load %arg2[%c1, %c0_13, %c0_14] : memref<2x8x8xf32, #tpu.memory_space<vmem>>, vector<1x8x8xf32>
    %17 = vector.shape_cast %16 : vector<1x8x8xf32> to vector<8x8xf32>
    %cst_15 = arith.constant dense<0.000000e+00> : vector<8x1xf32>
    %18 = tpu.matmul %17, %12, %cst_15 {dimension_numbers = #tpu.dot_dimension_numbers<[1], [0], [0], [1], [0, 0, 1, 1], [], []>} : vector<8x8xf32>, vector<8x1xf32>, vector<8x1xf32> -> vector<8x1xf32>
    %19 = arith.maximumf %15, %18 : vector<8x1xf32>
    %20 = arith.subf %15, %19 : vector<8x1xf32>
    %21 = math.exp %20 : vector<8x1xf32>
    %22 = arith.subf %18, %19 : vector<8x1xf32>
    %23 = math.exp %22 : vector<8x1xf32>
    %24 = arith.addf %21, %23 : vector<8x1xf32>
    %cst_16 = arith.constant 1.000000e+00 : f32
    %25 = vector.broadcast %cst_16 : f32 to vector<8x1xf32>
    %26 = arith.divf %25, %24 : vector<8x1xf32>
    %c0_17 = arith.constant 0 : index
    %c0_18 = arith.constant 0 : index
    %27 = vector.load %arg3[%c0_17, %c0_18] : memref<8x256xf32, #tpu.memory_space<vmem>>, vector<8x256xf32>
    %28 = arith.mulf %21, %26 : vector<8x1xf32>
    %29 = vector.broadcast %28 : vector<8x1xf32> to vector<8x256xf32>
    %30 = arith.mulf %27, %29 : vector<8x256xf32>
    %c0_19 = arith.constant 0 : index
    %c0_20 = arith.constant 0 : index
    %31 = vector.load %arg4[%c0_19, %c0_20] : memref<8x256xf32, #tpu.memory_space<vmem>>, vector<8x256xf32>
    %32 = arith.mulf %23, %26 : vector<8x1xf32>
    %33 = vector.broadcast %32 : vector<8x1xf32> to vector<8x256xf32>
    %34 = arith.mulf %31, %33 : vector<8x256xf32>
    %35 = arith.addf %30, %34 : vector<8x256xf32>
    %c0_21 = arith.constant 0 : index
    %c0_22 = arith.constant 0 : index
    %36 = vector.load %arg5[%c0_21, %c0_22] : memref<8x256xf32, #tpu.memory_space<vmem>>, vector<8x256xf32>
    tpu.vector_store %arg5[%c0_21, %c0_22], %35 {strides = array<i32>} : memref<8x256xf32, #tpu.memory_space<vmem>>, vector<8x256xf32>,
    return
  }
  func.func @transform_0(%arg0: i32) -> (i32, i32) {
    %c0_i32 = arith.constant 0 : i32
    %c0_i32_0 = arith.constant 0 : i32
    %c0_i32_1 = arith.constant 0 : i32
    return %c0_i32, %c0_i32_0 : i32, i32
  }
  func.func @transform_1(%arg0: i32) -> (i32, i32, i32) {
    %c0_i32 = arith.constant 0 : i32
    %c0_i32_0 = arith.constant 0 : i32
    %c0_i32_1 = arith.constant 0 : i32
    %c0_i32_2 = arith.constant 0 : i32
    return %c0_i32, %c0_i32_0, %c0_i32_1 : i32, i32, i32
  }
  func.func @transform_2(%arg0: i32) -> (i32, i32) {
    %c0_i32 = arith.constant 0 : i32
    %c0_i32_0 = arith.constant 0 : i32
    %c0_i32_1 = arith.constant 0 : i32
    return %c0_i32, %c0_i32_0 : i32, i32
  }
  func.func @transform_3(%arg0: i32) -> (i32, i32) {
    %c0_i32 = arith.constant 0 : i32
    %c0_i32_0 = arith.constant 0 : i32
    %c0_i32_1 = arith.constant 0 : i32
    return %c0_i32, %c0_i32_0 : i32, i32
  }
  func.func @transform_4(%arg0: i32) -> (i32, i32) {
    %c0_i32 = arith.constant 0 : i32
    %c0_i32_0 = arith.constant 0 : i32
    %c0_i32_1 = arith.constant 0 : i32
    return %c0_i32, %c0_i32_0 : i32, i32
  }
}

module attributes {stable_mosaic.version = 11 : i64} {
  func.func @_pool_kernel(%arg0: i32, %arg1: i32, %arg2: memref<8x256xf32, #tpu.memory_space<vmem>>, %arg3: memref<8x256xf32, #tpu.memory_space<vmem>>, %arg4: memref<1x8x1xf32, #tpu.memory_space<vmem>>) attributes {dimension_semantics = [#tpu.dimension_semantics<parallel>, #tpu.dimension_semantics<arbitrary>], iteration_bounds = array<i64: 1, 1>, scalar_prefetch = 0 : i64, scratch_operands = 0 : i64, tpu.core_type = #tpu.core_type<tc>, window_params = [{transform_indices = @transform_0, window_bounds = array<i64: 8, 256>}, {transform_indices = @transform_1, window_bounds = array<i64: 8, 256>}, {transform_indices = @transform_2, window_bounds = array<i64: 1, 8, 1>}]} {
    %c0_i32 = arith.constant 0 : i32
    %0 = arith.cmpi eq, %arg1, %c0_i32 : i32
    %1 = arith.extui %0 : i1 to i32
    %c0_i32_0 = arith.constant 0 : i32
    %2 = arith.cmpi ne, %1, %c0_i32_0 : i32
    scf.if %2 {
      %cst_10 = arith.constant 0.000000e+00 : f32
      %14 = vector.broadcast %cst_10 : f32 to vector<8x1xf32>
      %c0_11 = arith.constant 0 : index
      %c0_12 = arith.constant 0 : index
      %c0_13 = arith.constant 0 : index
      %15 = vector.load %arg4[%c0_11, %c0_12, %c0_13] : memref<1x8x1xf32, #tpu.memory_space<vmem>>, vector<1x8x1xf32>
      %16 = vector.shape_cast %15 : vector<1x8x1xf32> to vector<8x1xf32>
      %17 = vector.shape_cast %14 : vector<8x1xf32> to vector<1x8x1xf32>
      tpu.vector_store %arg4[%c0_11, %c0_12, %c0_13], %17 {strides = array<i32>} : memref<1x8x1xf32, #tpu.memory_space<vmem>>, vector<1x8x1xf32>,
    } else {
    }
    %c0 = arith.constant 0 : index
    %c0_1 = arith.constant 0 : index
    %3 = vector.load %arg2[%c0, %c0_1] : memref<8x256xf32, #tpu.memory_space<vmem>>, vector<8x256xf32>
    %c0_2 = arith.constant 0 : index
    %c0_3 = arith.constant 0 : index
    %4 = vector.load %arg3[%c0_2, %c0_3] : memref<8x256xf32, #tpu.memory_space<vmem>>, vector<8x256xf32>
    %5 = arith.addf %3, %4 : vector<8x256xf32>
    %c0_4 = arith.constant 0 : index
    %c0_5 = arith.constant 0 : index
    %c0_6 = arith.constant 0 : index
    %6 = vector.load %arg4[%c0_4, %c0_5, %c0_6] : memref<1x8x1xf32, #tpu.memory_space<vmem>>, vector<1x8x1xf32>
    %7 = vector.shape_cast %6 : vector<1x8x1xf32> to vector<8x1xf32>
    %cst = arith.constant dense<0.000000e+00> : vector<8xf32>
    %8 = vector.multi_reduction <add>, %5, %cst [1] : vector<8x256xf32> to vector<8xf32>
    %9 = vector.shape_cast %8 : vector<8xf32> to vector<8x1xf32>
    %10 = arith.addf %7, %9 : vector<8x1xf32>
    %c0_7 = arith.constant 0 : index
    %c0_8 = arith.constant 0 : index
    %c0_9 = arith.constant 0 : index
    %11 = vector.load %arg4[%c0_7, %c0_8, %c0_9] : memref<1x8x1xf32, #tpu.memory_space<vmem>>, vector<1x8x1xf32>
    %12 = vector.shape_cast %11 : vector<1x8x1xf32> to vector<8x1xf32>
    %13 = vector.shape_cast %10 : vector<8x1xf32> to vector<1x8x1xf32>
    tpu.vector_store %arg4[%c0_7, %c0_8, %c0_9], %13 {strides = array<i32>} : memref<1x8x1xf32, #tpu.memory_space<vmem>>, vector<1x8x1xf32>,
    return
  }
  func.func @transform_0(%arg0: i32, %arg1: i32) -> (i32, i32) {
    %c1_i32 = arith.constant 1 : i32
    %0 = arith.muli %arg0, %c1_i32 : i32
    %1 = arith.addi %0, %arg1 : i32
    %c0_i32 = arith.constant 0 : i32
    %c0_i32_0 = arith.constant 0 : i32
    return %c0_i32, %1 : i32, i32
  }
  func.func @transform_1(%arg0: i32, %arg1: i32) -> (i32, i32) {
    %c1_i32 = arith.constant 1 : i32
    %0 = arith.muli %arg0, %c1_i32 : i32
    %1 = arith.addi %0, %arg1 : i32
    %c0_i32 = arith.constant 0 : i32
    %c0_i32_0 = arith.constant 0 : i32
    return %c0_i32, %1 : i32, i32
  }
  func.func @transform_2(%arg0: i32, %arg1: i32) -> (i32, i32, i32) {
    %c0_i32 = arith.constant 0 : i32
    %c0_i32_0 = arith.constant 0 : i32
    %c0_i32_1 = arith.constant 0 : i32
    return %arg0, %c0_i32, %c0_i32_0 : i32, i32, i32
  }
}

</mosaic_0001>

<bundles_post_ra>
// kernel: tpu_custom_call.1
= control target key start
LH: loop header
LB: loop body
LE: loop exit
PB: predicated region body
PF: predicated region fallthrough
CT: control target
= control target key end

     0   :  { %9 = vsyncpa [#allocation3], 0  ;;  %s606_s0 = inlined_call_operand.hbm [shape: f32[8,8], index: 0, kind: input, shape index: {}]   ;;  %s607_s1 = inlined_call_operand.hbm [shape: f32[2,8,8], index: 1, kind: input, shape index: {}]   ;;  %s608_s2 = inlined_call_operand.hbm [shape: f32[8,256], index: 2, kind: input, shape index: {}]   ;;  %s609_s3 = inlined_call_operand.hbm [shape: f32[8,256], index: 3, kind: input, shape index: {}]   ;;  %s610_s4 = inlined_call_operand.hbm [shape: f32[8,256], index: 4, kind: output, shape index: {}]  }
   0x1   :  { %10 = vsyncpa [#allocation6], 0 }
   0x2   :  { %11 = vsyncpa [#allocation9], 0 }
   0x3   :  { %12 = vsyncpa [#allocation4], 0  ;;  %s511_s15 = smov [#allocation5]   ;;  %s393_s19 = scalar_lea.hbm %s607_s1, 256 }
   0x4   :  { %s28_s16 = sshll.u32 %s511_s15, 4  ;;  %p394_p0 = scmp.ne.s32.totalorder %s607_s1, %s393_s19  ;;  %s29_s16 = int_to_ptr.vmem [resolvable:$true] %s28_s16 }
   0x5   :  { %p397_p1 = scmp.lt.u32.totalorder %s393_s19, %s607_s1 }
   0x7   :  { %p399_p2 = pnand %p397_p1, %p394_p0 }
   0x9   :  { %402 = shalt.err (!%p399_p2)
}
   0xa   :  { %s403_s24 = scalar_lea.vmem %s29_s16, 256  ;;  %p408_p4 = scmp.lt.s32.totalorder %s29_s16, %s29_s16 }
   0xb   :  { %p404_p3 = scmp.ne.s32.totalorder %s29_s16, %s403_s24  ;;  %p409_p5 = scmp.lt.s32.totalorder %s403_s24, %s403_s24 }
   0xd   :  { %p410_p6 = por %p409_p5, %p408_p4 }
   0xf   :  { %p411_p7 = pnand %p410_p6, %p404_p3 }
  0x11   :  { %414 = shalt.err (!%p411_p7)
}
  0x12   :  { %s512_s25 = smov 128   ;;  %s513_s26 = smov 8  }
  0x13   :  { %34 = dma.hbm_to_vmem [thread:$0]  %s607_s1, 256, %s29_s16, [#allocation6], %s512_s25, %s512_s25, %s513_s26  }
  0x14   :  { %s514_s29 = smov [#allocation2]   ;;  %s515_s5 = smov [#allocation7]  }
  0x15   :  { %s19_s30 = sshll.u32 %s514_s29, 4  ;;  %s41_s6 = sshll.u32 %s515_s5, 4  ;;  %s20_s30 = int_to_ptr.vmem [resolvable:$true] %s19_s30  ;;  %s42_s6 = int_to_ptr.vmem [resolvable:$true] %s41_s6 }
  0x16   :  { %s415_s9 = scalar_lea.hbm %s606_s0, 128 }
  0x17   :  { %p416_p8 = scmp.ne.s32.totalorder %s606_s0, %s415_s9  ;;  %p419_p9 = scmp.lt.u32.totalorder %s415_s9, %s606_s0 }
  0x19   :  { %p421_p10 = pnand %p419_p9, %p416_p8 }
  0x1b   :  { %424 = shalt.err (!%p421_p10)
}
  0x1c   :  { %s425_s1 = scalar_lea.vmem %s20_s30, 128  ;;  %p430_p12 = scmp.lt.s32.totalorder %s20_s30, %s20_s30 }
  0x1d   :  { %p426_p11 = scmp.ne.s32.totalorder %s20_s30, %s425_s1  ;;  %p431_p13 = scmp.lt.s32.totalorder %s425_s1, %s425_s1 }
  0x1f   :  { %p432_p0 = por %p431_p13, %p430_p12 }
  0x21   :  { %p433_p1 = pnand %p432_p0, %p426_p11 }
  0x23   :  { %436 = shalt.err (!%p433_p1)
}
  0x24   :  { %22 = dma.hbm_to_vmem [thread:$0]  %s606_s0, 128, %s20_s30, [#allocation3]  }
  0x25   :  { %s437_s18 = scalar_lea.hbm %s608_s2, 256 }
  0x26   :  { %p438_p2 = scmp.ne.s32.totalorder %s608_s2, %s437_s18  ;;  %p441_p3 = scmp.lt.u32.totalorder %s437_s18, %s608_s2 }
  0x28   :  { %p443_p4 = pnand %p441_p3, %p438_p2 }
  0x2a   :  { %446 = shalt.err (!%p443_p4)
}
  0x2b   :  { %s447_s23 = scalar_lea.vmem %s42_s6, 256  ;;  %p452_p6 = scmp.lt.s32.totalorder %s42_s6, %s42_s6 }
  0x2c   :  { %p448_p5 = scmp.ne.s32.totalorder %s42_s6, %s447_s23  ;;  %p453_p7 = scmp.lt.s32.totalorder %s447_s23, %s447_s23 }
  0x2e   :  { %p454_p8 = por %p453_p7, %p452_p6 }
  0x30   :  { %p455_p9 = pnand %p454_p8, %p448_p5 }
  0x32   :  { %458 = shalt.err (!%p455_p9)
}
  0x33   :  { %44 = dma.hbm_to_vmem [thread:$0]  %s608_s2, 256, %s42_s6, [#allocation6]  }
  0x34   :  { %s516_s25 = smov [#allocation8]   ;;  %s459_s29 = scalar_lea.hbm %s609_s3, 256 }
  0x35   :  { %s51_s26 = sshll.u32 %s516_s25, 4  ;;  %p460_p10 = scmp.ne.s32.totalorder %s609_s3, %s459_s29  ;;  %s52_s26 = int_to_ptr.vmem [resolvable:$true] %s51_s26 }
  0x36   :  { %p463_p11 = scmp.lt.u32.totalorder %s459_s29, %s609_s3 }
  0x38   :  { %p465_p12 = pnand %p463_p11, %p460_p10 }
  0x3a   :  { %468 = shalt.err (!%p465_p12)
}
  0x3b   :  { %s469_s9 = scalar_lea.vmem %s52_s26, 256  ;;  %p474_p0 = scmp.lt.s32.totalorder %s52_s26, %s52_s26 }
  0x3c   :  { %p470_p13 = scmp.ne.s32.totalorder %s52_s26, %s469_s9  ;;  %p475_p1 = scmp.lt.s32.totalorder %s469_s9, %s469_s9 }
  0x3e   :  { %p476_p2 = por %p475_p1, %p474_p0 }
  0x40   :  { %p477_p3 = pnand %p476_p2, %p470_p13 }
  0x42   :  { %480 = shalt.err (!%p477_p3)
}
  0x43   :  { %54 = dma.hbm_to_vmem [thread:$0]  %s609_s3, 256, %s52_s26, [#allocation9]  }
  0x44   :  { %503 = dma.done.wait [#allocation3], 128  }
  0x45   :  { %504 = vsyncadd [#allocation3], 4294967168 }
  0x46   :  { %505 = dma.done.wait [#allocation6], 512  }
  0x47   :  { %506 = vsyncadd [#allocation6], 4294966784 }
  0x48   :  { %507 = dma.done.wait [#allocation9], 256  }
  0x49   :  { %508 = vsyncadd [#allocation9], 4294967040  ;;  %v67_v0 = vld [vmem:[#allocation7] sm:$0xff]  ;;  %v68_v1 = vld [vmem:[#allocation7 + $0x8] sm:$0xff]  ;;  %v517_v6 = vmov 0.0   ;;  %vm518_vm0 = vmmov 0  }
  0x4a   :  { %v72_v2 = vld [vmem:[#allocation8] sm:$0xff]  ;;  %v69_v3 = vadd.f32 %v68_v1, %v67_v0  ;;  %v73_v4 = vld [vmem:[#allocation8 + $0x8] sm:$0xff]  ;;  %360 = vmatprep.subr.mxu0 %v517_v6  ;;  %365 = vmatprep.subr.mxu1 %v517_v6  ;;  %v79_v11 = vld [vmem:[#allocation2] sm:$0xff]  ;;  %vm80_vm1 = vcmask 64512   ;;  %v519_v17 = vmov 0   ;;  %s520_s3 = smov [#allocation10]  }
  0x4b   :  { %v74_v5 = vadd.f32 %v73_v4, %v72_v2  ;;  %362 = vmatprep.mubr.msk.f32.mxu0 %vm518_vm0, %v517_v6  ;;  %367 = vmatprep.mubr.msk.f32.mxu1 %vm518_vm0, %v517_v6  ;;  %v155_v15 = vld [vmem:[#allocation5] sm:$0xff]  ;;  %v230_v16 = vld [vmem:[#allocation5 + $0x8] sm:$0xff]  ;;  %s340_s10 = sshll.u32 %s520_s3, 4  ;;  %s341_s10 = int_to_ptr.vmem [resolvable:$true] %s340_s10 }
  0x4c   :  { %70 = vadd.xlane.f32.xlu0 %v69_v3  ;;  %385 = vset.pattern.permute.xlu1 %v519_v17  ;;  %s481_s11 = scalar_lea.vmem %s341_s10, 256  ;;  %p486_p5 = scmp.lt.s32.totalorder %s341_s10, %s341_s10 }
  0x4d   :  { %386 = vset.pattern.permute.xlu0 %v519_v17  ;;  %p482_p4 = scmp.ne.s32.totalorder %s341_s10, %s481_s11  ;;  %p487_p6 = scmp.lt.s32.totalorder %s481_s11, %s481_s11 }
  0x4f   :  { %p488_p7 = por %p487_p6, %p486_p5 }
  0x50   :  { %75 = vadd.xlane.f32.xlu0 %v74_v5 }
  0x51   :  { %p489_p8 = pnand %p488_p7, %p482_p4 }
  0xd9   :  { %v71_v7 = vpop.xlane.xlu0 %70 }
  0xdd   :  { %v76_v8 = vpop.xlane.xlu0 %75 }
  0xde   :  { %v77_v9 = vadd.f32 %v76_v8, %v71_v7 }
  0xe0   :  { %v78_v10 = vmul.f32 0.00390625, %v77_v9 }
  0xe2   :  { %361 = vmatpush3.msra.mxu0 %v78_v10 }
  0xe3   :  { %363 = vmatmul.mubr.msk.f32.vlgmr.msra.gmra.mrb[0].mxu0 %vm80_vm1, %v79_v11  ;;  %370 = vmatprep.subr.mxu0 %v517_v6 }
  0xe4   :  { %372 = vmatprep.mubr.msk.f32.mxu0 %vm518_vm0, %v517_v6 }
 0x1b6   :  { %v150_v12 = vpop.f32.mrb[0].mxu0 }
 0x1b7   :  { %v154_v13 = vmax.f32 %v150_v12, 0.0  ;;  %v364_v14 = vpop.f32.mrb[1].mxu0 }
 0x1b9   :  { %366 = vmatpush3.msra.mxu1 %v154_v13  ;;  %371 = vmatpush3.msra.mxu0 %v154_v13 }
 0x1ba   :  { %368 = vmatmul.mubr.msk.f32.vlgmr.msra.gmra.mrb[0].mxu1 %vm80_vm1, %v155_v15  ;;  %373 = vmatmul.mubr.msk.f32.vlgmr.msra.gmra.mrb[2].mxu0 %vm80_vm1, %v230_v16 }
 0x28d   :  { %v225_v18 = vpop.f32.mrb[0].mxu1  ;;  %v300_v19 = vpop.f32.mrb[2].mxu0 }
 0x28e   :  { %v304_v20 = vmax.f32 %v225_v18, %v300_v19  ;;  %v369_v21 = vpop.f32.mrb[1].mxu1  ;;  %v374_v22 = vpop.f32.mrb[3].mxu0 }
 0x290   :  { %v305_v23 = vsub.f32 %v225_v18, %v304_v20  ;;  %v308_v24 = vsub.f32 %v300_v19, %v304_v20 }
 0x292   :  { %v306_v25 = vmul.f32 1.442695, %v305_v23  ;;  %v309_v26 = vmul.f32 1.442695, %v308_v24 }
 0x294   :  { %387 = vpow2.f32 %v306_v25 }
 0x295   :  { %389 = vpow2.f32 %v309_v26 }
 0x29e   :  { %v388_v27 = vpop.eup %387 }
 0x29f   :  { %v390_v28 = vpop.eup %389 }
 0x2a0   :  { %v311_v29 = vadd.f32 %v390_v28, %v388_v27 }
 0x2a2   :  { %391 = vrcp.f32 %v311_v29 }
 0x2ac   :  { %v392_v30 = vpop.eup %391 }
 0x2ad   :  { %v314_v31 = vmul.f32 %v392_v30, %v388_v27  ;;  %v322_v32 = vmul.f32 %v392_v30, %v390_v28 }
 0x2af   :  { %317 = vperm.xlu1 %385, %v314_v31  }
 0x2b3   :  { %325 = vperm.xlu1 %385, %v322_v32  }
 0x32e   :  { %v318_v33 = vpop.permute.xlu1 %317 }
 0x32f   :  { %v320_v35 = vmul.f32 %v318_v33, %v67_v0  ;;  %v321_v36 = vmul.f32 %v318_v33, %v68_v1 }
 0x332   :  { %v326_v34 = vpop.permute.xlu1 %325 }
 0x333   :  { %v328_v37 = vmul.f32 %v326_v34, %v72_v2  ;;  %v329_v38 = vmul.f32 %v326_v34, %v73_v4 }
 0x335   :  { %v330_v39 = vadd.f32 %v328_v37, %v320_v35  ;;  %v331_v40 = vadd.f32 %v329_v38, %v321_v36 }
 0x337   :  { %332 = vst [vmem:[#allocation10] sm:$0xff] %v330_v39  ;;  %333 = vst [vmem:[#allocation10 + $0x8] sm:$0xff] %v331_v40 }
 0x338   :  { %492 = shalt.err (!%p489_p8)
}
 0x339   :  { %s493_s1 = scalar_lea.hbm %s610_s4, 256 }
 0x33a   :  { %p494_p9 = scmp.ne.s32.totalorder %s610_s4, %s493_s1  ;;  %p497_p10 = scmp.lt.u32.totalorder %s493_s1, %s610_s4 }
 0x33c   :  { %p499_p11 = pnand %p497_p10, %p494_p9 }
 0x33e   :  { %502 = shalt.err (!%p499_p11)
}
 0x33f   :  { %343 = dma.vmem_to_hbm [thread:$0]  %s341_s10, 256, %s610_s4, [#allocation4]  }
 0x340   :  { %509 = dma.done.wait [#allocation4], 256  }
 0x341   :  { %510 = vsyncadd [#allocation4], 4294967040 }
 0x342   :  { %347 = vsyncpa [#allocation3], 1 }
 0x343   :  { %348 = vsyncpa [#allocation6], 1 }
 0x344   :  { %349 = vsyncpa [#allocation9], 1 }
 0x345   :  { %350 = vsyncpa [#allocation4], 1 }

// kernel: tpu_custom_call.1
= control target key start
LH: loop header
LB: loop body
LE: loop exit
PB: predicated region body
PF: predicated region fallthrough
CT: control target
= control target key end

     0   :  { %7 = vsyncpa [#allocation3], 0  ;;  %s174_s0 = inlined_call_operand.hbm [shape: f32[8,256], index: 0, kind: input, shape index: {}]   ;;  %s175_s1 = inlined_call_operand.hbm [shape: f32[8,256], index: 1, kind: input, shape index: {}]   ;;  %s176_s2 = inlined_call_operand.vmem [shape: f32[1,8,1], index: 2, kind: output, shape index: {}]  }
   0x1   :  { %8 = vsyncpa [#allocation5], 0  ;;  %s123_s9 = smov [#allocation2]   ;;  %s124_s11 = smov [#allocation4]  }
   0x2   :  { %s19_s10 = sshll.u32 %s123_s9, 4  ;;  %s33_s12 = sshll.u32 %s124_s11, 4  ;;  %s20_s10 = int_to_ptr.vmem [resolvable:$true] %s19_s10  ;;  %s34_s12 = int_to_ptr.vmem [resolvable:$true] %s33_s12 }
   0x3   :  { %s75_s15 = scalar_lea.hbm %s174_s0, 256 }
   0x4   :  { %p76_p0 = scmp.ne.s32.totalorder %s174_s0, %s75_s15  ;;  %p79_p1 = scmp.lt.u32.totalorder %s75_s15, %s174_s0 }
   0x6   :  { %p81_p2 = pnand %p79_p1, %p76_p0 }
   0x8   :  { %84 = shalt.err (!%p81_p2)
}
   0x9   :  { %s85_s20 = scalar_lea.vmem %s20_s10, 256  ;;  %p90_p4 = scmp.lt.s32.totalorder %s20_s10, %s20_s10 }
   0xa   :  { %p86_p3 = scmp.ne.s32.totalorder %s20_s10, %s85_s20  ;;  %p91_p5 = scmp.lt.s32.totalorder %s85_s20, %s85_s20 }
   0xc   :  { %p92_p6 = por %p91_p5, %p90_p4 }
   0xe   :  { %p93_p7 = pnand %p92_p6, %p86_p3 }
  0x10   :  { %96 = shalt.err (!%p93_p7)
}
  0x11   :  { %22 = dma.hbm_to_vmem [thread:$0]  %s174_s0, 256, %s20_s10, [#allocation3]  }
  0x12   :  { %s97_s25 = scalar_lea.hbm %s175_s1, 256 }
  0x13   :  { %p98_p8 = scmp.ne.s32.totalorder %s175_s1, %s97_s25  ;;  %p101_p9 = scmp.lt.u32.totalorder %s97_s25, %s175_s1 }
  0x15   :  { %p103_p10 = pnand %p101_p9, %p98_p8 }
  0x17   :  { %106 = shalt.err (!%p103_p10)
}
  0x18   :  { %s107_s30 = scalar_lea.vmem %s34_s12, 256  ;;  %p112_p12 = scmp.lt.s32.totalorder %s34_s12, %s34_s12 }
  0x19   :  { %p108_p11 = scmp.ne.s32.totalorder %s34_s12, %s107_s30  ;;  %p113_p13 = scmp.lt.s32.totalorder %s107_s30, %s107_s30 }
  0x1b   :  { %p114_p0 = por %p113_p13, %p112_p12 }
  0x1d   :  { %p115_p1 = pnand %p114_p0, %p108_p11 }
  0x1f   :  { %118 = shalt.err (!%p115_p1)
}
  0x20   :  { %36 = dma.hbm_to_vmem [thread:$0]  %s175_s1, 256, %s34_s12, [#allocation5]  }
  0x21   :  { %119 = dma.done.wait [#allocation3], 256  }
  0x22   :  { %120 = vsyncadd [#allocation3], 4294967040 }
  0x23   :  { %121 = dma.done.wait [#allocation5], 256  }
  0x24   :  { %122 = vsyncadd [#allocation5], 4294967040  ;;  %vm51_vm0 = vcmask 7168   ;;  %v125_v0 = vmov 0.0   ;;  %v53_v1 = vld [vmem:[#allocation2] sm:$0xff]  ;;  %v54_v2 = vld [vmem:[#allocation2 + $0x8] sm:$0xff] }
  0x25   :  { %52 = vst.msk [vmem:[%s176_s2] sm:$0xff] %vm51_vm0, %v125_v0  ;;  %v55_v3 = vld [vmem:[#allocation4] sm:$0xff]  ;;  %v56_v4 = vld [vmem:[#allocation4 + $0x8] sm:$0xff] }
  0x26   :  { %v57_v5 = vadd.f32 %v55_v3, %v53_v1  ;;  %v58_v6 = vadd.f32 %v56_v4, %v54_v2 }
  0x28   :  { %v60_v7 = vadd.f32 %v58_v6, %v57_v5 }
  0x2a   :  { %61 = vadd.xlane.f32.xlu0 %v60_v7 }
  0x2c   :  { %v59_v8 = vld [vmem:[%s176_s2] sm:$0xff] }
  0xb7   :  { %v62_v9 = vpop.xlane.xlu0 %61 }
  0xb8   :  { %v63_v10 = vadd.f32 %v62_v9, %v59_v8 }
  0xba   :  { %65 = vst.msk [vmem:[%s176_s2] sm:$0xff] %vm51_vm0, %v63_v10 }
  0xbb   :  { %70 = vsyncpa [#allocation3], 1 }
  0xbc   :  { %71 = vsyncpa [#allocation5], 1 }

</bundles_post_ra>
